<compile_context>
chip_gen: v7x
topology: tpu7x:2x2x1
jax: 0.10.0
libtpu: 0.0.40
codegen_flags: <defaults>
</compile_context>

<pallas_src>
import functools
import math

import jax
import jax.numpy as jnp
from jax.experimental import pallas as pl
from jax.experimental.pallas import tpu as pltpu


def _leaky_relu(v, slope=0.2):
    return jnp.where(v >= 0, v, slope * v)


def _ublock_kernel(*refs, dilations, halo, ts, nj, cin):
    """One grid step = one (batch, seq-tile) output block.

    refs: [xc_left,] xc_center, [xc_right,]  (1, 2*cin, ts) upsampled concat(x, x_dblock)
          wr (H, cin), br (H, 1),
          w0 (H, 3*2cin), b0 (H, 1), w1..w3 (H, 3H), b1..b3 (H, 1),
          o_ref (1, H, ts)
    """
    if halo > 0:
        xc_l, xc_c, xc_r = refs[0], refs[1], refs[2]
        wrefs = refs[3:-1]
    else:
        xc_c = refs[0]
        xc_l = xc_r = None
        wrefs = refs[1:-1]
    o_ref = refs[-1]
    wr, br, w0, b0, w1, b1, w2, b2, w3, b3 = wrefs

    xc = xc_c[0]                                          # (2cin, ts) f32

    if halo > 0:
        j = pl.program_id(1)
        width = ts + 2 * halo
        # Halo'd window assembled from the left / right neighbour tiles.
        win = jnp.concatenate(
            [xc_l[0][:, ts - halo:], xc, xc_r[0][:, :halo]], axis=1)
        lane = jax.lax.broadcasted_iota(jnp.int32, (1, width), 1)
        # Window columns that fall outside [0, S) globally must behave like the
        # convs' zero padding; re-imposed on every layer input via edge_zero.
        kill = ((lane < halo) & (j == 0)) | \
               ((lane >= ts + halo) & (j == nj - 1))
    else:
        width = ts
        win = xc
        kill = None

    def edge_zero(v):
        return jnp.where(kill, 0.0, v) if kill is not None else v

    def conv3(h, w_ref, b_ref, d):
        # Dilated k=3 "same" conv as ONE MXU dot on a stacked (3C, W) tap.
        # (pltpu.roll on the XLU would avoid the unaligned lane slices; the
        #  slice+concat form is used here for unambiguous correctness.)
        c, w = h.shape
        z = jnp.zeros((c, d), h.dtype)
        tap_l = jnp.concatenate([z, h[:, :w - d]], axis=1)    # h[:, t-d]
        tap_r = jnp.concatenate([h[:, d:], z], axis=1)        # h[:, t+d]
        taps = jnp.concatenate([tap_l, h, tap_r], axis=0)     # (3C, W)
        y = jnp.dot(w_ref[...], taps.astype(w_ref.dtype),
                    preferred_element_type=jnp.float32)
        return y + b_ref[...]

    # Main path.  PyTorch: lrelu -> interpolate -> (lrelu -> conv) x 4.  Nearest
    # interpolation commutes with lrelu, so apply lrelu twice before conv0.
    h = edge_zero(_leaky_relu(_leaky_relu(win)))
    h = conv3(h, w0, b0, dilations[0])
    h = conv3(edge_zero(_leaky_relu(h)), w1, b1, dilations[1])
    h = conv3(edge_zero(_leaky_relu(h)), w2, b2, dilations[2])
    h = conv3(edge_zero(_leaky_relu(h)), w3, b3, dilations[3])
    if halo > 0:
        h = h[:, halo:halo + ts]                  # valid interior of the window

    # Residual path: 1x1 conv on the un-activated upsampled x (= first `cin`
    # rows of the center tile).  Computed last to keep its live range short.
    residual = jnp.dot(wr[...], xc[:cin, :].astype(wr.dtype),
                       preferred_element_type=jnp.float32) + br[...]
    o_ref[0] = (h + residual).astype(o_ref.dtype)


def _pick_seq_tile(seq_len, halo, target):
    """Largest multiple-of-128 divisor of seq_len that is <= target and >= halo."""
    target = max(int(target), 128)
    best = None
    for tile in range(128, min(seq_len, target) + 1, 128):
        if seq_len % tile == 0 and tile >= halo:
            best = tile
    if best is None:
        return seq_len, 1            # short sequences: one tile, no halo needed
    return best, seq_len // best


def ublock_forward(x, x_dblock, params, *, factor, dilations,
                   seq_tile=1024, matmul_dtype=jnp.float32):
    B, cin, T = x.shape
    hidden = params["wr"].shape[0]
    S = T * factor
    recept = int(sum(dilations))          # halo needed by the 4-conv chain

    # Glue (pure data movement): channel concat + nearest upsample.
    # TODO(synk): fold the nearest upsample into the kernel (per-tile expansion in
    # VMEM) so the (B, 2cin, S) intermediate is never materialized in HBM.
    xc_up = jnp.repeat(jnp.concatenate([x, x_dblock], axis=1), factor, axis=-1)

    # NOTE: pick seq_tile ~512-1024 for v7x (64 MiB VMEM), up to ~2048 on v5e/v6e.
    ts, nj = _pick_seq_tile(S, recept, seq_tile)
    halo = recept if nj > 1 else 0

    mdt = matmul_dtype
    wr = params["wr"][:, :, 0].astype(mdt)                               # (H, cin)
    br = params["br"].reshape(hidden, 1).astype(jnp.float32)
    # (H, C, 3) -> (H, 3, C) -> (H, 3C): column blocks [k=0 | k=1 | k=2].
    conv_ws = [jnp.transpose(params[f"w{i}"], (0, 2, 1)).reshape(hidden, -1).astype(mdt)
               for i in range(4)]
    conv_bs = [params[f"b{i}"].reshape(hidden, 1).astype(jnp.float32) for i in range(4)]

    kernel = functools.partial(_ublock_kernel, dilations=tuple(dilations),
                               halo=halo, ts=ts, nj=nj, cin=cin)

    def wspec(arr):
        # Weights / biases: full-array block, same block at every grid step.
        # TODO(synk): on v7x single-buffer these (pipeline_mode=pl.Buffered(1)) to
        # reclaim VMEM for larger sequence tiles.
        zeros = (0,) * arr.ndim
        return pl.BlockSpec(arr.shape, lambda b, j: zeros)

    center = pl.BlockSpec((1, 2 * cin, ts), lambda b, j: (b, 0, j))
    if halo > 0:
        left = pl.BlockSpec((1, 2 * cin, ts),
                            lambda b, j: (b, 0, jnp.maximum(j - 1, 0)))
        right = pl.BlockSpec((1, 2 * cin, ts),
                             lambda b, j: (b, 0, jnp.minimum(j + 1, nj - 1)))
        xc_specs, xc_args = [left, center, right], [xc_up, xc_up, xc_up]
    else:
        xc_specs, xc_args = [center], [xc_up]

    weight_args = [wr, br,
                   conv_ws[0], conv_bs[0], conv_ws[1], conv_bs[1],
                   conv_ws[2], conv_bs[2], conv_ws[3], conv_bs[3]]

    return pl.pallas_call(
        kernel,
        out_shape=jax.ShapeDtypeStruct((B, hidden, S), jnp.float32),
        grid=(B, nj),
        in_specs=xc_specs + [wspec(a) for a in weight_args],
        out_specs=pl.BlockSpec((1, hidden, ts), lambda b, j: (b, 0, j)),
        compiler_params=pltpu.CompilerParams(
            dimension_semantics=("parallel", "parallel")),
    )(*xc_args, *weight_args)


# ---------------- pure-JAX reference (matches the PyTorch forward) ----------------

def _conv1d_ref(x, w, b, dilation, padding):
    out = jax.lax.conv_general_dilated(
        x, w, window_strides=(1,), padding=[(padding, padding)],
        rhs_dilation=(dilation,),
        dimension_numbers=("NCH", "OIH", "NCH"),
        precision=jax.lax.Precision.HIGHEST)
    return out + b[None, :, None]


def ublock_reference(x, x_dblock, params, *, factor, dilations):
    residual = jnp.repeat(x, factor, axis=-1)
    residual = _conv1d_ref(residual, params["wr"], params["br"], 1, 0)
    h = jnp.concatenate([x, x_dblock], axis=1)
    h = jnp.where(h >= 0, h, 0.2 * h)
    h = jnp.repeat(h, factor, axis=-1)
    for i, d in enumerate(dilations):
        h = jnp.where(h >= 0, h, 0.2 * h)
        h = _conv1d_ref(h, params[f"w{i}"], params[f"b{i}"], d, d)
    return h + residual


# ---------------- deterministic parameter init (orthogonal / zeros) ----------------

def _orthogonal(key, shape):
    rows = shape[0]
    cols = int(math.prod(shape[1:]))
    n, m = max(rows, cols), min(rows, cols)
    a = jax.random.normal(key, (n, m), dtype=jnp.float32)
    q, r = jnp.linalg.qr(a)
    q = q * jnp.sign(jnp.diagonal(r))[None, :]
    if rows < cols:
        q = q.T
    return q.reshape(shape).astype(jnp.float32)


def init_ublock_params(key, input_size, hidden_size):
    ks = jax.random.split(key, 5)
    params = {
        "wr": _orthogonal(ks[0], (hidden_size, input_size, 1)),
        "br": jnp.zeros((hidden_size,), jnp.float32),
        "w0": _orthogonal(ks[1], (hidden_size, 2 * input_size, 3)),
        "b0": jnp.zeros((hidden_size,), jnp.float32),
    }
    for i in range(1, 4):
        params[f"w{i}"] = _orthogonal(ks[i + 1], (hidden_size, hidden_size, 3))
        params[f"b{i}"] = jnp.zeros((hidden_size,), jnp.float32)
    return params


if __name__ == "__main__":
    B, input_size, hidden_size, T = 2, 4, 32, 8
    factor = 2
    dilations = (1, 2, 4, 8)

    key = jax.random.PRNGKey(0)
    kx, kd, kp = jax.random.split(key, 3)
    x = jax.random.normal(kx, (B, input_size, T), dtype=jnp.float32)
    x_dblock = jax.random.normal(kd, (B, input_size, T), dtype=jnp.float32)
    params = init_ublock_params(kp, input_size, hidden_size)

    # 1) small shape: single sequence tile, f32 matmuls (matches PyTorch numerics).
    out = ublock_forward(x, x_dblock, params, factor=factor, dilations=dilations)
    out = jax.block_until_ready(out)
    ref = ublock_reference(x, x_dblock, params, factor=factor, dilations=dilations)
    assert out.shape == (B, hidden_size, T * factor)
    err = float(jnp.max(jnp.abs(out - ref)))
    assert jnp.allclose(out, ref, atol=1e-3, rtol=1e-3), f"f32 max_err={err}"

    # 2) longer sequence: exercises the halo'd sequence-tiling path (4 seq tiles).
    T2 = 256
    x2 = jax.random.normal(jax.random.PRNGKey(1), (1, input_size, T2), jnp.float32)
    d2 = jax.random.normal(jax.random.PRNGKey(2), (1, input_size, T2), jnp.float32)
    out2 = ublock_forward(x2, d2, params, factor=factor, dilations=dilations,
                          seq_tile=128)
    out2 = jax.block_until_ready(out2)
    ref2 = ublock_reference(x2, d2, params, factor=factor, dilations=dilations)
    err2 = float(jnp.max(jnp.abs(out2 - ref2)))
    assert jnp.allclose(out2, ref2, atol=1e-3, rtol=1e-3), f"tiled max_err={err2}"

    # 3) bf16 matmul operands (f32 accumulation): looser tolerance.
    out3 = ublock_forward(x, x_dblock, params, factor=factor, dilations=dilations,
                          matmul_dtype=jnp.bfloat16)
    out3 = jax.block_until_ready(out3)
    err3 = float(jnp.max(jnp.abs(out3 - ref)))
    assert jnp.allclose(out3, ref, atol=1e-1, rtol=1e-1), f"bf16 max_err={err3}"

    print("KERNEL_OK")
</pallas_src>

<mosaic_0001>
module attributes {stable_mosaic.version = 11 : i64} {
  func.func @_ublock_kernel(%arg0: i32, %arg1: i32, %arg2: memref<1x8x16xf32, #tpu.memory_space<vmem>>, %arg3: memref<32x4xf32, #tpu.memory_space<vmem>>, %arg4: memref<32x1xf32, #tpu.memory_space<vmem>>, %arg5: memref<32x24xf32, #tpu.memory_space<vmem>>, %arg6: memref<32x1xf32, #tpu.memory_space<vmem>>, %arg7: memref<32x96xf32, #tpu.memory_space<vmem>>, %arg8: memref<32x1xf32, #tpu.memory_space<vmem>>, %arg9: memref<32x96xf32, #tpu.memory_space<vmem>>, %arg10: memref<32x1xf32, #tpu.memory_space<vmem>>, %arg11: memref<32x96xf32, #tpu.memory_space<vmem>>, %arg12: memref<32x1xf32, #tpu.memory_space<vmem>>, %arg13: memref<1x32x16xf32, #tpu.memory_space<vmem>>) attributes {dimension_semantics = [#tpu.dimension_semantics<parallel>, #tpu.dimension_semantics<parallel>], iteration_bounds = array<i64: 2, 1>, scalar_prefetch = 0 : i64, scratch_operands = 0 : i64, tpu.core_type = #tpu.core_type<tc>, window_params = [{transform_indices = @transform_0, window_bounds = array<i64: 1, 8, 16>}, {pipeline_mode = #tpu.pipeline_mode<synchronous>, transform_indices = @transform_1, window_bounds = array<i64: 32, 4>}, {pipeline_mode = #tpu.pipeline_mode<synchronous>, transform_indices = @transform_2, window_bounds = array<i64: 32, 1>}, {pipeline_mode = #tpu.pipeline_mode<synchronous>, transform_indices = @transform_3, window_bounds = array<i64: 32, 24>}, {pipeline_mode = #tpu.pipeline_mode<synchronous>, transform_indices = @transform_4, window_bounds = array<i64: 32, 1>}, {pipeline_mode = #tpu.pipeline_mode<synchronous>, transform_indices = @transform_5, window_bounds = array<i64: 32, 96>}, {pipeline_mode = #tpu.pipeline_mode<synchronous>, transform_indices = @transform_6, window_bounds = array<i64: 32, 1>}, {pipeline_mode = #tpu.pipeline_mode<synchronous>, transform_indices = @transform_7, window_bounds = array<i64: 32, 96>}, {pipeline_mode = #tpu.pipeline_mode<synchronous>, transform_indices = @transform_8, window_bounds = array<i64: 32, 1>}, {pipeline_mode = #tpu.pipeline_mode<synchronous>, transform_indices = @transform_9, window_bounds = array<i64: 32, 96>}, {pipeline_mode = #tpu.pipeline_mode<synchronous>, transform_indices = @transform_10, window_bounds = array<i64: 32, 1>}, {transform_indices = @transform_11, window_bounds = array<i64: 1, 32, 16>}]} {
    %c0 = arith.constant 0 : index
    %c0_0 = arith.constant 0 : index
    %c0_1 = arith.constant 0 : index
    %0 = vector.load %arg2[%c0, %c0_0, %c0_1] : memref<1x8x16xf32, #tpu.memory_space<vmem>>, vector<1x8x16xf32>
    %1 = vector.shape_cast %0 : vector<1x8x16xf32> to vector<8x16xf32>
    %cst = arith.constant 0.000000e+00 : f32
    %2 = vector.broadcast %cst : f32 to vector<8x16xf32>
    %3 = arith.cmpf oge, %1, %2 : vector<8x16xf32>
    %cst_2 = arith.constant 2.000000e-01 : f32
    %4 = vector.broadcast %cst_2 : f32 to vector<8x16xf32>
    %5 = arith.mulf %4, %1 : vector<8x16xf32>
    %6 = arith.select %3, %1, %5 : vector<8x16xi1>, vector<8x16xf32>
    %cst_3 = arith.constant 0.000000e+00 : f32
    %7 = vector.broadcast %cst_3 : f32 to vector<8x16xf32>
    %8 = arith.cmpf oge, %6, %7 : vector<8x16xf32>
    %cst_4 = arith.constant 2.000000e-01 : f32
    %9 = vector.broadcast %cst_4 : f32 to vector<8x16xf32>
    %10 = arith.mulf %9, %6 : vector<8x16xf32>
    %11 = arith.select %8, %6, %10 : vector<8x16xi1>, vector<8x16xf32>
    %cst_5 = arith.constant 0.000000e+00 : f32
    %12 = vector.broadcast %cst_5 : f32 to vector<8x1xf32>
    %13 = vector.extract_strided_slice %11 {offsets = [0, 0], sizes = [8, 15], strides = [1, 1]} : vector<8x16xf32> to vector<8x15xf32>
    %14 = tpu.concatenate %12, %13 in 1 : vector<8x1xf32>, vector<8x15xf32> -> vector<8x16xf32>
    %15 = vector.extract_strided_slice %11 {offsets = [0, 1], sizes = [8, 15], strides = [1, 1]} : vector<8x16xf32> to vector<8x15xf32>
    %16 = tpu.concatenate %15, %12 in 1 : vector<8x15xf32>, vector<8x1xf32> -> vector<8x16xf32>
    %17 = tpu.concatenate %14, %11, %16 in 0 : vector<8x16xf32>, vector<8x16xf32>, vector<8x16xf32> -> vector<24x16xf32>
    %c0_6 = arith.constant 0 : index
    %c0_7 = arith.constant 0 : index
    %18 = vector.load %arg5[%c0_6, %c0_7] : memref<32x24xf32, #tpu.memory_space<vmem>>, vector<32x24xf32>
    %cst_8 = arith.constant dense<0.000000e+00> : vector<32x16xf32>
    %19 = tpu.matmul %18, %17, %cst_8 {dimension_numbers = #tpu.dot_dimension_numbers<[1], [0], [0], [1], [0, 0, 1, 1], [], []>} : vector<32x24xf32>, vector<24x16xf32>, vector<32x16xf32> -> vector<32x16xf32>
    %c0_9 = arith.constant 0 : index
    %c0_10 = arith.constant 0 : index
    %20 = vector.load %arg6[%c0_9, %c0_10] : memref<32x1xf32, #tpu.memory_space<vmem>>, vector<32x1xf32>
    %21 = vector.broadcast %20 : vector<32x1xf32> to vector<32x16xf32>
    %22 = arith.addf %19, %21 : vector<32x16xf32>
    %cst_11 = arith.constant 0.000000e+00 : f32
    %23 = vector.broadcast %cst_11 : f32 to vector<32x16xf32>
    %24 = arith.cmpf oge, %22, %23 : vector<32x16xf32>
    %cst_12 = arith.constant 2.000000e-01 : f32
    %25 = vector.broadcast %cst_12 : f32 to vector<32x16xf32>
    %26 = arith.mulf %25, %22 : vector<32x16xf32>
    %27 = arith.select %24, %22, %26 : vector<32x16xi1>, vector<32x16xf32>
    %cst_13 = arith.constant 0.000000e+00 : f32
    %28 = vector.broadcast %cst_13 : f32 to vector<32x2xf32>
    %29 = vector.extract_strided_slice %27 {offsets = [0, 0], sizes = [32, 14], strides = [1, 1]} : vector<32x16xf32> to vector<32x14xf32>
    %30 = tpu.concatenate %28, %29 in 1 : vector<32x2xf32>, vector<32x14xf32> -> vector<32x16xf32>
    %31 = vector.extract_strided_slice %27 {offsets = [0, 2], sizes = [32, 14], strides = [1, 1]} : vector<32x16xf32> to vector<32x14xf32>
    %32 = tpu.concatenate %31, %28 in 1 : vector<32x14xf32>, vector<32x2xf32> -> vector<32x16xf32>
    %33 = tpu.concatenate %30, %27, %32 in 0 : vector<32x16xf32>, vector<32x16xf32>, vector<32x16xf32> -> vector<96x16xf32>
    %c0_14 = arith.constant 0 : index
    %c0_15 = arith.constant 0 : index
    %34 = vector.load %arg7[%c0_14, %c0_15] : memref<32x96xf32, #tpu.memory_space<vmem>>, vector<32x96xf32>
    %cst_16 = arith.constant dense<0.000000e+00> : vector<32x16xf32>
    %35 = tpu.matmul %34, %33, %cst_16 {dimension_numbers = #tpu.dot_dimension_numbers<[1], [0], [0], [1], [0, 0, 1, 1], [], []>} : vector<32x96xf32>, vector<96x16xf32>, vector<32x16xf32> -> vector<32x16xf32>
    %c0_17 = arith.constant 0 : index
    %c0_18 = arith.constant 0 : index
    %36 = vector.load %arg8[%c0_17, %c0_18] : memref<32x1xf32, #tpu.memory_space<vmem>>, vector<32x1xf32>
    %37 = vector.broadcast %36 : vector<32x1xf32> to vector<32x16xf32>
    %38 = arith.addf %35, %37 : vector<32x16xf32>
    %cst_19 = arith.constant 0.000000e+00 : f32
    %39 = vector.broadcast %cst_19 : f32 to vector<32x16xf32>
    %40 = arith.cmpf oge, %38, %39 : vector<32x16xf32>
    %cst_20 = arith.constant 2.000000e-01 : f32
    %41 = vector.broadcast %cst_20 : f32 to vector<32x16xf32>
    %42 = arith.mulf %41, %38 : vector<32x16xf32>
    %43 = arith.select %40, %38, %42 : vector<32x16xi1>, vector<32x16xf32>
    %cst_21 = arith.constant 0.000000e+00 : f32
    %44 = vector.broadcast %cst_21 : f32 to vector<32x4xf32>
    %45 = vector.extract_strided_slice %43 {offsets = [0, 0], sizes = [32, 12], strides = [1, 1]} : vector<32x16xf32> to vector<32x12xf32>
    %46 = tpu.concatenate %44, %45 in 1 : vector<32x4xf32>, vector<32x12xf32> -> vector<32x16xf32>
    %47 = vector.extract_strided_slice %43 {offsets = [0, 4], sizes = [32, 12], strides = [1, 1]} : vector<32x16xf32> to vector<32x12xf32>
    %48 = tpu.concatenate %47, %44 in 1 : vector<32x12xf32>, vector<32x4xf32> -> vector<32x16xf32>
    %49 = tpu.concatenate %46, %43, %48 in 0 : vector<32x16xf32>, vector<32x16xf32>, vector<32x16xf32> -> vector<96x16xf32>
    %c0_22 = arith.constant 0 : index
    %c0_23 = arith.constant 0 : index
    %50 = vector.load %arg9[%c0_22, %c0_23] : memref<32x96xf32, #tpu.memory_space<vmem>>, vector<32x96xf32>
    %cst_24 = arith.constant dense<0.000000e+00> : vector<32x16xf32>
    %51 = tpu.matmul %50, %49, %cst_24 {dimension_numbers = #tpu.dot_dimension_numbers<[1], [0], [0], [1], [0, 0, 1, 1], [], []>} : vector<32x96xf32>, vector<96x16xf32>, vector<32x16xf32> -> vector<32x16xf32>
    %c0_25 = arith.constant 0 : index
    %c0_26 = arith.constant 0 : index
    %52 = vector.load %arg10[%c0_25, %c0_26] : memref<32x1xf32, #tpu.memory_space<vmem>>, vector<32x1xf32>
    %53 = vector.broadcast %52 : vector<32x1xf32> to vector<32x16xf32>
    %54 = arith.addf %51, %53 : vector<32x16xf32>
    %cst_27 = arith.constant 0.000000e+00 : f32
    %55 = vector.broadcast %cst_27 : f32 to vector<32x16xf32>
    %56 = arith.cmpf oge, %54, %55 : vector<32x16xf32>
    %cst_28 = arith.constant 2.000000e-01 : f32
    %57 = vector.broadcast %cst_28 : f32 to vector<32x16xf32>
    %58 = arith.mulf %57, %54 : vector<32x16xf32>
    %59 = arith.select %56, %54, %58 : vector<32x16xi1>, vector<32x16xf32>
    %cst_29 = arith.constant 0.000000e+00 : f32
    %60 = vector.broadcast %cst_29 : f32 to vector<32x8xf32>
    %61 = vector.extract_strided_slice %59 {offsets = [0, 0], sizes = [32, 8], strides = [1, 1]} : vector<32x16xf32> to vector<32x8xf32>
    %62 = tpu.concatenate %60, %61 in 1 : vector<32x8xf32>, vector<32x8xf32> -> vector<32x16xf32>
    %63 = vector.extract_strided_slice %59 {offsets = [0, 8], sizes = [32, 8], strides = [1, 1]} : vector<32x16xf32> to vector<32x8xf32>
    %64 = tpu.concatenate %63, %60 in 1 : vector<32x8xf32>, vector<32x8xf32> -> vector<32x16xf32>
    %65 = tpu.concatenate %62, %59, %64 in 0 : vector<32x16xf32>, vector<32x16xf32>, vector<32x16xf32> -> vector<96x16xf32>
    %c0_30 = arith.constant 0 : index
    %c0_31 = arith.constant 0 : index
    %66 = vector.load %arg11[%c0_30, %c0_31] : memref<32x96xf32, #tpu.memory_space<vmem>>, vector<32x96xf32>
    %cst_32 = arith.constant dense<0.000000e+00> : vector<32x16xf32>
    %67 = tpu.matmul %66, %65, %cst_32 {dimension_numbers = #tpu.dot_dimension_numbers<[1], [0], [0], [1], [0, 0, 1, 1], [], []>} : vector<32x96xf32>, vector<96x16xf32>, vector<32x16xf32> -> vector<32x16xf32>
    %c0_33 = arith.constant 0 : index
    %c0_34 = arith.constant 0 : index
    %68 = vector.load %arg12[%c0_33, %c0_34] : memref<32x1xf32, #tpu.memory_space<vmem>>, vector<32x1xf32>
    %69 = vector.broadcast %68 : vector<32x1xf32> to vector<32x16xf32>
    %70 = arith.addf %67, %69 : vector<32x16xf32>
    %c0_35 = arith.constant 0 : index
    %c0_36 = arith.constant 0 : index
    %71 = vector.load %arg3[%c0_35, %c0_36] : memref<32x4xf32, #tpu.memory_space<vmem>>, vector<32x4xf32>
    %72 = vector.extract_strided_slice %1 {offsets = [0, 0], sizes = [4, 16], strides = [1, 1]} : vector<8x16xf32> to vector<4x16xf32>
    %cst_37 = arith.constant dense<0.000000e+00> : vector<32x16xf32>
    %73 = tpu.matmul %71, %72, %cst_37 {dimension_numbers = #tpu.dot_dimension_numbers<[1], [0], [0], [1], [0, 0, 1, 1], [], []>} : vector<32x4xf32>, vector<4x16xf32>, vector<32x16xf32> -> vector<32x16xf32>
    %c0_38 = arith.constant 0 : index
    %c0_39 = arith.constant 0 : index
    %74 = vector.load %arg4[%c0_38, %c0_39] : memref<32x1xf32, #tpu.memory_space<vmem>>, vector<32x1xf32>
    %75 = vector.broadcast %74 : vector<32x1xf32> to vector<32x16xf32>
    %76 = arith.addf %73, %75 : vector<32x16xf32>
    %77 = arith.addf %70, %76 : vector<32x16xf32>
    %c0_40 = arith.constant 0 : index
    %c0_41 = arith.constant 0 : index
    %c0_42 = arith.constant 0 : index
    %78 = vector.load %arg13[%c0_40, %c0_41, %c0_42] : memref<1x32x16xf32, #tpu.memory_space<vmem>>, vector<1x32x16xf32>
    %79 = vector.shape_cast %78 : vector<1x32x16xf32> to vector<32x16xf32>
    %80 = vector.shape_cast %77 : vector<32x16xf32> to vector<1x32x16xf32>
    tpu.vector_store %arg13[%c0_40, %c0_41, %c0_42], %80 {strides = array<i32>} : memref<1x32x16xf32, #tpu.memory_space<vmem>>, vector<1x32x16xf32>,
    return
  }
  func.func @transform_0(%arg0: i32, %arg1: i32) -> (i32, i32, i32) {
    %c0_i32 = arith.constant 0 : i32
    %c0_i32_0 = arith.constant 0 : i32
    return %arg0, %c0_i32, %arg1 : i32, i32, i32
  }
  func.func @transform_1(%arg0: i32, %arg1: i32) -> (i32, i32) {
    %c0_i32 = arith.constant 0 : i32
    %c0_i32_0 = arith.constant 0 : i32
    %c0_i32_1 = arith.constant 0 : i32
    return %c0_i32, %c0_i32_0 : i32, i32
  }
  func.func @transform_2(%arg0: i32, %arg1: i32) -> (i32, i32) {
    %c0_i32 = arith.constant 0 : i32
    %c0_i32_0 = arith.constant 0 : i32
    %c0_i32_1 = arith.constant 0 : i32
    return %c0_i32, %c0_i32_0 : i32, i32
  }
  func.func @transform_3(%arg0: i32, %arg1: i32) -> (i32, i32) {
    %c0_i32 = arith.constant 0 : i32
    %c0_i32_0 = arith.constant 0 : i32
    %c0_i32_1 = arith.constant 0 : i32
    return %c0_i32, %c0_i32_0 : i32, i32
  }
  func.func @transform_4(%arg0: i32, %arg1: i32) -> (i32, i32) {
    %c0_i32 = arith.constant 0 : i32
    %c0_i32_0 = arith.constant 0 : i32
    %c0_i32_1 = arith.constant 0 : i32
    return %c0_i32, %c0_i32_0 : i32, i32
  }
  func.func @transform_5(%arg0: i32, %arg1: i32) -> (i32, i32) {
    %c0_i32 = arith.constant 0 : i32
    %c0_i32_0 = arith.constant 0 : i32
    %c0_i32_1 = arith.constant 0 : i32
    return %c0_i32, %c0_i32_0 : i32, i32
  }
  func.func @transform_6(%arg0: i32, %arg1: i32) -> (i32, i32) {
    %c0_i32 = arith.constant 0 : i32
    %c0_i32_0 = arith.constant 0 : i32
    %c0_i32_1 = arith.constant 0 : i32
    return %c0_i32, %c0_i32_0 : i32, i32
  }
  func.func @transform_7(%arg0: i32, %arg1: i32) -> (i32, i32) {
    %c0_i32 = arith.constant 0 : i32
    %c0_i32_0 = arith.constant 0 : i32
    %c0_i32_1 = arith.constant 0 : i32
    return %c0_i32, %c0_i32_0 : i32, i32
  }
  func.func @transform_8(%arg0: i32, %arg1: i32) -> (i32, i32) {
    %c0_i32 = arith.constant 0 : i32
    %c0_i32_0 = arith.constant 0 : i32
    %c0_i32_1 = arith.constant 0 : i32
    return %c0_i32, %c0_i32_0 : i32, i32
  }
  func.func @transform_9(%arg0: i32, %arg1: i32) -> (i32, i32) {
    %c0_i32 = arith.constant 0 : i32
    %c0_i32_0 = arith.constant 0 : i32
    %c0_i32_1 = arith.constant 0 : i32
    return %c0_i32, %c0_i32_0 : i32, i32
  }
  func.func @transform_10(%arg0: i32, %arg1: i32) -> (i32, i32) {
    %c0_i32 = arith.constant 0 : i32
    %c0_i32_0 = arith.constant 0 : i32
    %c0_i32_1 = arith.constant 0 : i32
    return %c0_i32, %c0_i32_0 : i32, i32
  }
  func.func @transform_11(%arg0: i32, %arg1: i32) -> (i32, i32, i32) {
    %c0_i32 = arith.constant 0 : i32
    %c0_i32_0 = arith.constant 0 : i32
    return %arg0, %c0_i32, %arg1 : i32, i32, i32
  }
}

</mosaic_0001>

<bundles_post_ra>
// kernel: tpu_custom_call.1
= control target key start
LH: loop header
LB: loop body
LE: loop exit
PB: predicated region body
PF: predicated region fallthrough
CT: control target
= control target key end

     0   :  { %s1847_s17 = smov 0   ;;  %s1849_s18 = smov 0   ;;  %s2039_s0 = inlined_call_operand.vmem [shape: f32[2,8,16], index: 0, kind: input, shape index: {}]   ;;  %s2040_s1 = inlined_call_operand.vmem [shape: f32[32,4], index: 1, kind: input, shape index: {}]   ;;  %s2041_s2 = inlined_call_operand.vmem [shape: f32[32,1], index: 2, kind: input, shape index: {}]   ;;  %s2042_s3 = inlined_call_operand.vmem [shape: f32[32,24], index: 3, kind: input, shape index: {}]   ;;  %s2043_s4 = inlined_call_operand.vmem [shape: f32[32,1], index: 4, kind: input, shape index: {}]   ;;  %s2044_s5 = inlined_call_operand.vmem [shape: f32[32,96], index: 5, kind: input, shape index: {}]   ;;  %s2045_s6 = inlined_call_operand.vmem [shape: f32[32,1], index: 6, kind: input, shape index: {}]   ;;  %s2046_s7 = inlined_call_operand.vmem [shape: f32[32,96], index: 7, kind: input, shape index: {}]   ;;  %s2047_s8 = inlined_call_operand.vmem [shape: f32[32,1], index: 8, kind: input, shape index: {}]   ;;  %s2048_s9 = inlined_call_operand.vmem [shape: f32[32,96], index: 9, kind: input, shape index: {}]   ;;  %s2049_s10 = inlined_call_operand.vmem [shape: f32[32,1], index: 10, kind: input, shape index: {}]   ;;  %s2050_s11 = inlined_call_operand.vmem [shape: f32[2,32,16], index: 11, kind: output, shape index: {}]  }
   0x1   :  { %s1851_s19 = smov 0  }
   0x2 LB: > { %s33_s20 = sadd.s32 1, %s1771_s18  ;;  %p1306_p0 = scmp.ge.s32.totalorder %s1775_s19, 1  ;;  %s1775_s19 = sphi %s1851_s19, %s21_s19   ;;  %s1771_s18 = sphi %s1849_s18, %s2052_s18   ;;  %s1767_s17 = sphi %s1847_s17, %s2051_s17  }
   0x3   : > { %p35_p1 = scmp.ge.s32.totalorder %s33_s20, 2  ;;  %p355_p2 = scmp.lt.s32.totalorder %s1775_s19, 3 }
   0x5   : > { %s2054_s20 = smov (%p35_p1, %s33_s20), 0  ;;  %p356_p3 = pnand %p1306_p0, %p355_p2 }
   0x6   : > { %p400_p4 = scmp.lt.s32.totalorder (!%p356_p3), %s1767_s17, 1  ;;  %v433_v1 = vld [vmem:[%s2042_s3] sm:$0xff] (!%p356_p3)  ;;  %vm461_vm0 = vcmask (!%p356_p3), 195584   ;;  %s1777_s29 = smov (!%p356_p3), 1   ;;  %v1778_v7 = vmov (!%p356_p3), 0   ;;  %v438_v8 = vld [vmem:[%s2043_s4 + $0x8] sm:$0xff] (!%p356_p3) }
   0x7   : > { %359 = sbr.rel (%p356_p3) target bundleno = 1460 (0x5b4), region = 64  ;;  %1439 = vmatprep.mubr.msk.f32.mxu0 (!%p356_p3), %vm461_vm0, %v433_v1  ;;  %v437_v6 = vld [vmem:[%s2043_s4] sm:$0xff] (!%p356_p3)  ;;  %1691 = vset.pattern.permute.xlu1 (!%p356_p3), %v1778_v7  ;;  %s1779_s13 = smov (!%p356_p3), 127   ;;  %v439_v9 = vld [vmem:[%s2043_s4 + $0x10] sm:$0xff] (!%p356_p3)  ;;  %v440_v10 = vld [vmem:[%s2043_s4 + $0x18] sm:$0xff] (!%p356_p3)  ;;  %vm426_vm3 = vcmask (!%p356_p3), 7168  }
   0x8   : > { %443 = vperm.xlu1 (!%p356_p3), %1691, %v437_v6   ;;  %1692 = vset.pattern.permute.xlu0 (!%p356_p3), %v1778_v7  ;;  %vm1310_vm4 = vmneg (!%p356_p3), %vm426_vm3  ;;  %vm1780_vm5 = vmmov (!%p356_p3), 1   ;;  %vm431_vm7 = vcmask (!%p356_p3), 121856   ;;  %v434_v14 = vld [vmem:[%s2042_s3 + $0x8] sm:$0xff] (!%p356_p3)  ;;  %v435_v15 = vld [vmem:[%s2042_s3 + $0x10] sm:$0xff] (!%p356_p3)  ;;  %s1781_s28 = smov (!%p356_p3), 2   ;;  %vm637_vm12 = vcmask (!%p356_p3), 785408  }
   0x9   : > { %vm1544_vm6 = vmpackc.low (!%p356_p3), %vm1780_vm5, %vm1310_vm4  ;;  %v436_v16 = vld [vmem:[%s2042_s3 + $0x18] sm:$0xff] (!%p356_p3)  ;;  %v613_v41 = vld [vmem:[%s2045_s6] sm:$0xff] (!%p356_p3)  ;;  %vm587_vm13 = vcmask (!%p356_p3), 15360   ;;  %s1783_s12 = smov (!%p356_p3), 4   ;;  %s1785_s15 = smov (!%p356_p3), 8  }
   0xa   : > { %v615_v42 = vld [vmem:[%s2045_s6 + $0x10] sm:$0xff] (!%p356_p3)  ;;  %v614_v43 = vld [vmem:[%s2045_s6 + $0x8] sm:$0xff] (!%p356_p3)  ;;  %v609_v44 = vld [vmem:[%s2044_s5] sm:$0xff] (!%p356_p3)  ;;  %s1786_s16 = smov (!%p356_p3), 120  }
   0xb   : > { %v616_v45 = vld [vmem:[%s2045_s6 + $0x18] sm:$0xff] (!%p356_p3)  ;;  %1469 = vmatprep.mubr.msk.f32.mxu1 (!%p356_p3), %vm637_vm12, %v609_v44  ;;  %vm1317_vm14 = vmneg (!%p356_p3), %vm587_vm13  ;;  %v610_v62 = vld [vmem:[%s2044_s5 + $0x8] sm:$0xff] (!%p356_p3) }
   0xc   : > { %448 = vperm.xlu1 (!%p356_p3), %1691, %v438_v8   ;;  %vm1550_vm15 = vmpackc.low (!%p356_p3), %vm1317_vm14, %vm1317_vm14  ;;  %v611_v63 = vld [vmem:[%s2044_s5 + $0x10] sm:$0xff] (!%p356_p3)  ;;  %v612_v1 = vld [vmem:[%s2044_s5 + $0x18] sm:$0xff] (!%p356_p3) }
   0xe   : > { %s2056_s17 = smov (!%p400_p4, %s1767_s17), 1 }
   0xf   : > { %s1307_s21 = sshll.u32 %s2056_s17, 3  ;;  %s1372_s23 = sshll.u32 %s2056_s17, 5 }
  0x10   : > { %s406_s24 = scalar_lea.vmem %s2039_s0, %s1307_s21  ;;  %458 = vperm.xlu1 %1691, %v440_v10   ;;  %s414_s26 = scalar_lea.vmem %s2050_s11, %s1372_s23 }
  0x11   : > { %v1871_v0 = vld [vmem:[%s406_s24] sm:$0xff] }
  0x12   : > { %vm416_vm1 = vcmp.ge.f32.partialorder %v1871_v0, 0.0  ;;  %v417_v2 = vmul.f32 0.2, %v1871_v0 }
  0x14   : > { %v418_v3 = vsel %vm416_vm1, %v1871_v0, %v417_v2 }
  0x15   : > { %vm419_vm2 = vcmp.ge.f32.partialorder %v418_v3, 0.0  ;;  %v420_v4 = vmul.f32 0.2, %v418_v3 }
  0x17   : > { %v421_v5 = vsel %vm419_vm2, %v418_v3, %v420_v4 }
  0x18   : > { %423 = vrot.lane.b32.xlu0 %v421_v5, %s1777_s29  ;;  %s1782_s29 = smov 126  }
  0x1c   : > { %428 = vrot.lane.b32.xlu0 %v421_v5, %s1779_s13  ;;  %s1784_s13 = smov 124  }
  0x20   : > { %453 = vperm.xlu0 %1692, %v439_v9  }
  0x87   : > { %v444_v17 = vpop.permute.xlu1 %443 }
  0x8a   : > { %v424_v11 = vpop.permute.xlu0 %423 }
  0x8b   : > { %v1543_v12 = vpack.c.bf16 %v421_v5, %v424_v11  ;;  %v449_v18 = vpop.permute.xlu1 %448 }
  0x8d   : > { %1545 = vmatprep.subr.msk.bf16.mxu0 %vm1544_vm6, %v1543_v12 }
  0x8e   : > { %1548 = vmatpush3.bf16.msk.msra.mxu0 %vm1544_vm6, %v1543_v12  ;;  %v429_v13 = vpop.permute.xlu0 %428  ;;  %vm763_vm6 = vcmask 31744  }
  0x8f   : > { %1437 = vmatprep.subr.msk.mxu0 %vm431_vm7, %v429_v13  ;;  %v459_v25 = vpop.permute.xlu1 %458 }
  0x92   : > { %1438 = vmatpush3.msk.msra.mxu0 %vm431_vm7, %v429_v13  ;;  %vm1333_vm7 = vmneg %vm763_vm6 }
  0x93   : > { %1440 = vmatmul.mubr.msk.f32.vlgmr.msra.gmra.mrb[0].mxu0 %vm461_vm0, %v434_v14 }
  0x94   : > { %1442 = vmatprep.mubr.msk.f32.mxu0 %vm461_vm0, %v435_v15 }
  0x97   : > { %1443 = vmatmul.mubr.msk.f32.gmra.mrb[2].mxu0 %vm461_vm0, %v436_v16  ;;  %vm604_vm0 = vcmask 113664  }
  0x98   : > { %vm1570_vm1 = vmpackc.low %vm604_vm0, %vm604_vm0  ;;  %vm1124_vm0 = vcmask 1043456  }
  0x9f   : > { %v454_v24 = vpop.permute.xlu0 %453 }
 0x166   : > { %v1441_v19 = vpop.f32.mrb[0].mxu0 }
 0x167   : > { %v546_v20 = vadd.f32 %v1441_v19, %v449_v18  ;;  %v540_v21 = vpop.f32.mrb[1].mxu0 }
 0x168   : > { %v541_v22 = vadd.f32 %v540_v21, %v444_v17 }
 0x169   : > { %vm560_vm8 = vcmp.ge.f32.partialorder %v546_v20, 0.0  ;;  %v564_v23 = vmul.f32 0.2, %v546_v20 }
 0x16a   : > { %vm559_vm9 = vcmp.ge.f32.partialorder %v541_v22, 0.0  ;;  %v563_v26 = vmul.f32 0.2, %v541_v22  ;;  %v1444_v27 = vpop.f32.mrb[2].mxu0 }
 0x16b   : > { %v568_v28 = vsel %vm560_vm8, %v546_v20, %v564_v23  ;;  %v556_v29 = vadd.f32 %v1444_v27, %v459_v25  ;;  %v550_v30 = vpop.f32.mrb[3].mxu0  ;;  %v790_v27 = vld [vmem:[%s2047_s8 + $0x8] sm:$0xff]  ;;  %vm1582_vm8 = vmpackc.low %vm1333_vm7, %vm1333_vm7 }
 0x16c   : > { %v567_v31 = vsel %vm559_vm9, %v541_v22, %v563_v26  ;;  %v551_v32 = vadd.f32 %v550_v30, %v454_v24  ;;  %v789_v26 = vld [vmem:[%s2047_s8] sm:$0xff]  ;;  %v792_v30 = vld [vmem:[%s2047_s8 + $0x18] sm:$0xff]  ;;  %vm780_vm9 = vcmask 97280  }
 0x16d   : > { %vm562_vm10 = vcmp.ge.f32.partialorder %v556_v29, 0.0  ;;  %v566_v33 = vmul.f32 0.2, %v556_v29  ;;  %v1693_v34 = vpack.i.bf16 %v568_v28, %v567_v31  ;;  %v1561_v36 = vpack.c.bf16 %v568_v28, %v567_v31  ;;  %v791_v28 = vld [vmem:[%s2047_s8 + $0x10] sm:$0xff] }
 0x16e   : > { %vm561_vm11 = vcmp.ge.f32.partialorder %v551_v32, 0.0  ;;  %v565_v35 = vmul.f32 0.2, %v551_v32 }
 0x16f   : > { %v570_v37 = vsel %vm562_vm10, %v556_v29, %v566_v33  ;;  %1694 = vrot.lane.b32.xlu1 %v1693_v34, %s1781_s28  ;;  %v785_v29 = vld [vmem:[%s2046_s7] sm:$0xff]  ;;  %vm1602_vm10 = vmpackc.low %vm780_vm9, %vm780_vm9 }
 0x170   : > { %v569_v38 = vsel %vm561_vm11, %v551_v32, %v565_v35  ;;  %1499 = vmatprep.mubr.msk.f32.mxu0 %vm637_vm12, %v785_v29 }
 0x171   : > { %v1698_v39 = vpack.i.bf16 %v570_v37, %v569_v38  ;;  %v1565_v40 = vpack.c.bf16 %v570_v37, %v569_v38 }
 0x173   : > { %1704 = vrot.lane.b32.xlu1 %v1693_v34, %s1782_s29  ;;  %1699 = vrot.lane.b32.xlu0 %v1698_v39, %s1781_s28 }
 0x177   : > { %619 = vperm.xlu1 %1691, %v613_v41   ;;  %1709 = vrot.lane.b32.xlu0 %v1698_v39, %s1782_s29 }
 0x17b   : > { %629 = vperm.xlu1 %1691, %v615_v42   ;;  %624 = vperm.xlu0 %1692, %v614_v43  }
 0x17f   : > { %634 = vperm.xlu0 %1692, %v616_v45  }
 0x1e1   : > { %v1695_v46 = vpop.permute.xlu1 %1694 }
 0x1e2   : > { %v1697_v47 = vunpack.i.h.bf16 %v1695_v46  ;;  %v1696_v48 = vunpack.i.l.bf16 %v1695_v46 }
 0x1e4   : > { %v1549_v49 = vpack.c.bf16 %v1697_v47, %v1696_v48  ;;  %v786_v47 = vld [vmem:[%s2046_s7 + $0x8] sm:$0xff]  ;;  %v787_v48 = vld [vmem:[%s2046_s7 + $0x10] sm:$0xff] }
 0x1e5   : > { %v1700_v50 = vpop.permute.xlu0 %1699  ;;  %v1705_v54 = vpop.permute.xlu1 %1704 }
 0x1e6   : > { %v1702_v51 = vunpack.i.h.bf16 %v1700_v50  ;;  %v1701_v52 = vunpack.i.l.bf16 %v1700_v50  ;;  %1551 = vmatprep.subr.msk.bf16.mxu1 %vm1550_vm15, %v1549_v49  ;;  %v1707_v55 = vunpack.i.h.bf16 %v1705_v54  ;;  %v1706_v56 = vunpack.i.l.bf16 %v1705_v54 }
 0x1e7   : > { %1554 = vmatpush3.bf16.msk.msra.mxu1 %vm1550_vm15, %v1549_v49  ;;  %v788_v49 = vld [vmem:[%s2046_s7 + $0x18] sm:$0xff] }
 0x1e8   : > { %v1555_v53 = vpack.c.bf16 %v1702_v51, %v1701_v52  ;;  %v1569_v58 = vpack.c.bf16 %v1707_v55, %v1706_v56 }
 0x1e9   : > { %v1710_v57 = vpop.permute.xlu0 %1709 }
 0x1ea   : > { %1557 = vmatprep.subr.msk.bf16.mxu1 %vm1550_vm15, %v1555_v53  ;;  %v1712_v59 = vunpack.i.h.bf16 %v1710_v57  ;;  %v1711_v60 = vunpack.i.l.bf16 %v1710_v57 }
 0x1eb   : > { %1560 = vmatpush3.bf16.msk.msra.mxu1 %vm1550_vm15, %v1555_v53 }
 0x1ec   : > { %1562 = vmatprep.subr.bf16.mxu1 %v1561_v36  ;;  %v1575_v61 = vpack.c.bf16 %v1712_v59, %v1711_v60 }
 0x1ef   : > { %1564 = vmatpush3.bf16.msra.mxu1 %v1561_v36 }
 0x1f0   : > { %1566 = vmatprep.subr.bf16.mxu1 %v1565_v40 }
 0x1f3   : > { %1568 = vmatpush3.bf16.msra.mxu1 %v1565_v40 }
 0x1f4   : > { %1571 = vmatprep.subr.msk.bf16.mxu1 %vm1570_vm1, %v1569_v58 }
 0x1f6   : > { %v620_v3 = vpop.permute.xlu1 %619 }
 0x1f7   : > { %1574 = vmatpush3.bf16.msk.msra.mxu1 %vm1570_vm1, %v1569_v58 }
 0x1f8   : > { %1577 = vmatprep.subr.msk.bf16.mxu1 %vm1570_vm1, %v1575_v61 }
 0x1fa   : > { %v625_v2 = vpop.permute.xlu0 %624  ;;  %v630_v12 = vpop.permute.xlu1 %629 }
 0x1fb   : > { %1580 = vmatpush3.bf16.msk.msra.mxu1 %vm1570_vm1, %v1575_v61  ;;  %vm938_vm1 = vcmask 64512  }
 0x1fe   : > { %1470 = vmatmul.mubr.msk.f32.vlgmr.msra.gmra.mrb[0].mxu1 %vm637_vm12, %v610_v62  ;;  %v635_v9 = vpop.permute.xlu0 %634 }
 0x1ff   : > { %1472 = vmatprep.mubr.msk.f32.mxu1 %vm637_vm12, %v611_v63 }
 0x202   : > { %1473 = vmatmul.mubr.msk.f32.gmra.mrb[2].mxu1 %vm637_vm12, %v612_v1 }
 0x2d1   : > { %v1471_v4 = vpop.f32.mrb[0].mxu1 }
 0x2d2   : > { %v722_v5 = vadd.f32 %v1471_v4, %v625_v2  ;;  %v716_v6 = vpop.f32.mrb[1].mxu1 }
 0x2d3   : > { %v717_v7 = vadd.f32 %v716_v6, %v620_v3 }
 0x2d4   : > { %vm736_vm2 = vcmp.ge.f32.partialorder %v722_v5, 0.0  ;;  %v740_v8 = vmul.f32 0.2, %v722_v5 }
 0x2d5   : > { %vm735_vm3 = vcmp.ge.f32.partialorder %v717_v7, 0.0  ;;  %v739_v10 = vmul.f32 0.2, %v717_v7  ;;  %v1474_v11 = vpop.f32.mrb[2].mxu1 }
 0x2d6   : > { %v744_v13 = vsel %vm736_vm2, %v722_v5, %v740_v8  ;;  %v732_v14 = vadd.f32 %v1474_v11, %v635_v9  ;;  %v726_v15 = vpop.f32.mrb[3].mxu1  ;;  %v963_v11 = vld [vmem:[%s2049_s10] sm:$0xff]  ;;  %vm1349_vm2 = vmneg %vm938_vm1 }
 0x2d7   : > { %v743_v16 = vsel %vm735_vm3, %v717_v7, %v739_v10  ;;  %v727_v17 = vadd.f32 %v726_v15, %v630_v12  ;;  %v964_v12 = vld [vmem:[%s2049_s10 + $0x8] sm:$0xff]  ;;  %v966_v15 = vld [vmem:[%s2049_s10 + $0x18] sm:$0xff]  ;;  %vm1614_vm3 = vmpackc.low %vm1349_vm2, %vm1349_vm2 }
 0x2d8   : > { %vm738_vm4 = vcmp.ge.f32.partialorder %v732_v14, 0.0  ;;  %v742_v18 = vmul.f32 0.2, %v732_v14  ;;  %v1713_v19 = vpack.i.bf16 %v744_v13, %v743_v16  ;;  %v1593_v21 = vpack.c.bf16 %v744_v13, %v743_v16  ;;  %v965_v13 = vld [vmem:[%s2049_s10 + $0x10] sm:$0xff]  ;;  %v1088_v16 = vld [vmem:[%s2041_s2] sm:$0xff] }
 0x2d9   : > { %vm737_vm5 = vcmp.ge.f32.partialorder %v727_v17, 0.0  ;;  %v741_v20 = vmul.f32 0.2, %v727_v17 }
 0x2da   : > { %v746_v22 = vsel %vm738_vm4, %v732_v14, %v742_v18  ;;  %1714 = vrot.lane.b32.xlu1 %v1713_v19, %s1783_s12  ;;  %v959_v14 = vld [vmem:[%s2048_s9] sm:$0xff]  ;;  %v1089_v18 = vld [vmem:[%s2041_s2 + $0x8] sm:$0xff]  ;;  %vm1634_vm4 = vmpackc.low %vm938_vm1, %vm938_vm1 }
 0x2db   : > { %v745_v23 = vsel %vm737_vm5, %v727_v17, %v741_v20  ;;  %1529 = vmatprep.mubr.msk.f32.mxu1 %vm637_vm12, %v959_v14  ;;  %v1085_v17 = vld [vmem:[%s2040_s1 + $0x8] sm:$0xff]  ;;  %v1086_v20 = vld [vmem:[%s2040_s1 + $0x10] sm:$0xff] }
 0x2dc   : > { %v1718_v24 = vpack.i.bf16 %v746_v22, %v745_v23  ;;  %v1597_v25 = vpack.c.bf16 %v746_v22, %v745_v23  ;;  %v1091_v22 = vld [vmem:[%s2041_s2 + $0x18] sm:$0xff] }
 0x2de   : > { %1719 = vrot.lane.b32.xlu0 %v1718_v24, %s1783_s12  ;;  %1724 = vrot.lane.b32.xlu1 %v1713_v19, %s1784_s13  ;;  %v1090_v19 = vld [vmem:[%s2041_s2 + $0x10] sm:$0xff] }
 0x2e2   : > { %1729 = vrot.lane.b32.xlu0 %v1718_v24, %s1784_s13  ;;  %795 = vperm.xlu1 %1691, %v789_v26  }
 0x2e6   : > { %800 = vperm.xlu0 %1692, %v790_v27   ;;  %805 = vperm.xlu1 %1691, %v791_v28  }
 0x2ea   : > { %810 = vperm.xlu0 %1692, %v792_v30  }
 0x34c   : > { %v1715_v31 = vpop.permute.xlu1 %1714 }
 0x34d   : > { %v1717_v32 = vunpack.i.h.bf16 %v1715_v31  ;;  %v1716_v33 = vunpack.i.l.bf16 %v1715_v31 }
 0x34f   : > { %v1581_v34 = vpack.c.bf16 %v1717_v32, %v1716_v33 }
 0x350   : > { %v1720_v35 = vpop.permute.xlu0 %1719  ;;  %v1725_v39 = vpop.permute.xlu1 %1724 }
 0x351   : > { %v1722_v36 = vunpack.i.h.bf16 %v1720_v35  ;;  %v1721_v37 = vunpack.i.l.bf16 %v1720_v35  ;;  %1583 = vmatprep.subr.msk.bf16.mxu0 %vm1582_vm8, %v1581_v34  ;;  %v1727_v40 = vunpack.i.h.bf16 %v1725_v39  ;;  %v1726_v41 = vunpack.i.l.bf16 %v1725_v39  ;;  %v960_v39 = vld [vmem:[%s2048_s9 + $0x8] sm:$0xff] }
 0x352   : > { %1586 = vmatpush3.bf16.msk.msra.mxu0 %vm1582_vm8, %v1581_v34 }
 0x353   : > { %v1587_v38 = vpack.c.bf16 %v1722_v36, %v1721_v37  ;;  %v1601_v43 = vpack.c.bf16 %v1727_v40, %v1726_v41  ;;  %v961_v40 = vld [vmem:[%s2048_s9 + $0x10] sm:$0xff]  ;;  %v962_v41 = vld [vmem:[%s2048_s9 + $0x18] sm:$0xff] }
 0x354   : > { %v1730_v42 = vpop.permute.xlu0 %1729 }
 0x355   : > { %1589 = vmatprep.subr.msk.bf16.mxu0 %vm1582_vm8, %v1587_v38  ;;  %v1732_v44 = vunpack.i.h.bf16 %v1730_v42  ;;  %v1731_v45 = vunpack.i.l.bf16 %v1730_v42 }
 0x356   : > { %1592 = vmatpush3.bf16.msk.msra.mxu0 %vm1582_vm8, %v1587_v38 }
 0x357   : > { %1594 = vmatprep.subr.bf16.mxu0 %v1593_v21  ;;  %v1607_v46 = vpack.c.bf16 %v1732_v44, %v1731_v45 }
 0x35a   : > { %1596 = vmatpush3.bf16.msra.mxu0 %v1593_v21  ;;  %v1087_v21 = vld [vmem:[%s2040_s1 + $0x18] sm:$0xff] }
 0x35b   : > { %1598 = vmatprep.subr.bf16.mxu0 %v1597_v25 }
 0x35e   : > { %1600 = vmatpush3.bf16.msra.mxu0 %v1597_v25 }
 0x35f   : > { %1603 = vmatprep.subr.msk.bf16.mxu0 %vm1602_vm10, %v1601_v43 }
 0x361   : > { %v796_v51 = vpop.permute.xlu1 %795 }
 0x362   : > { %1606 = vmatpush3.bf16.msk.msra.mxu0 %vm1602_vm10, %v1601_v43 }
 0x363   : > { %1609 = vmatprep.subr.msk.bf16.mxu0 %vm1602_vm10, %v1607_v46 }
 0x365   : > { %v801_v50 = vpop.permute.xlu0 %800  ;;  %v806_v60 = vpop.permute.xlu1 %805 }
 0x366   : > { %1612 = vmatpush3.bf16.msk.msra.mxu0 %vm1602_vm10, %v1607_v46 }
 0x367   : > { %1535 = vmatprep.subr.msk.mxu0 %vm1124_vm0, %v1871_v0 }
 0x369   : > { %1500 = vmatmul.mubr.msk.f32.vlgmr.msra.gmra.mrb[4].mxu0 %vm637_vm12, %v786_v47  ;;  %v811_v57 = vpop.permute.xlu0 %810 }
 0x36a   : > { %1502 = vmatprep.mubr.msk.f32.mxu0 %vm637_vm12, %v787_v48  ;;  %1536 = vmatpush3.msk.msra.mxu0 %vm1124_vm0, %v1871_v0  ;;  %v1084_v0 = vld [vmem:[%s2040_s1] sm:$0xff] }
 0x36d   : > { %1503 = vmatmul.mubr.msk.f32.gmra.mrb[6].mxu0 %vm637_vm12, %v788_v49 }
 0x36e   : > { %1537 = vmatprep.mubr.msk.f32.mxu0 %vm763_vm6, %v1084_v0 }
 0x371   : > { %1538 = vmatmul.mubr.msk.f32.vlgmr.msra.gmra.mrb[8].mxu0 %vm763_vm6, %v1085_v17 }
 0x372   : > { %1540 = vmatprep.mubr.msk.f32.mxu0 %vm763_vm6, %v1086_v20 }
 0x375   : > { %1541 = vmatmul.mubr.msk.f32.gmra.mrb[10].mxu0 %vm763_vm6, %v1087_v21 }
 0x43c   : > { %v1501_v52 = vpop.f32.mrb[4].mxu0 }
 0x43d   : > { %v897_v53 = vadd.f32 %v1501_v52, %v801_v50  ;;  %v891_v54 = vpop.f32.mrb[5].mxu0 }
 0x43e   : > { %v892_v55 = vadd.f32 %v891_v54, %v796_v51 }
 0x43f   : > { %vm911_vm11 = vcmp.ge.f32.partialorder %v897_v53, 0.0  ;;  %v915_v56 = vmul.f32 0.2, %v897_v53 }
 0x440   : > { %vm910_vm13 = vcmp.ge.f32.partialorder %v892_v55, 0.0  ;;  %v914_v58 = vmul.f32 0.2, %v892_v55  ;;  %v1504_v59 = vpop.f32.mrb[6].mxu0 }
 0x441   : > { %v919_v61 = vsel %vm911_vm11, %v897_v53, %v915_v56  ;;  %v907_v62 = vadd.f32 %v1504_v59, %v811_v57  ;;  %v901_v63 = vpop.f32.mrb[7].mxu0 }
 0x442   : > { %v918_v1 = vsel %vm910_vm13, %v892_v55, %v914_v58  ;;  %v902_v2 = vadd.f32 %v901_v63, %v806_v60 }
 0x443   : > { %vm913_vm14 = vcmp.ge.f32.partialorder %v907_v62, 0.0  ;;  %v917_v3 = vmul.f32 0.2, %v907_v62  ;;  %v1733_v4 = vpack.i.bf16 %v919_v61, %v918_v1  ;;  %v1625_v6 = vpack.c.bf16 %v919_v61, %v918_v1 }
 0x444   : > { %vm912_vm15 = vcmp.ge.f32.partialorder %v902_v2, 0.0  ;;  %v916_v5 = vmul.f32 0.2, %v902_v2  ;;  %v1539_v42 = vpop.f32.mrb[8].mxu0 }
 0x445   : > { %v921_v7 = vsel %vm913_vm14, %v907_v62, %v917_v3  ;;  %1734 = vrot.lane.b32.xlu1 %v1733_v4, %s1785_s15  ;;  %v1194_v43 = vpop.f32.mrb[9].mxu0 }
 0x446   : > { %v920_v8 = vsel %vm912_vm15, %v902_v2, %v916_v5 }
 0x447   : > { %v1738_v9 = vpack.i.bf16 %v921_v7, %v920_v8  ;;  %v1629_v10 = vpack.c.bf16 %v921_v7, %v920_v8 }
 0x448   : > { %v1542_v44 = vpop.f32.mrb[10].mxu0 }
 0x449   : > { %1739 = vrot.lane.b32.xlu0 %v1738_v9, %s1785_s15  ;;  %1744 = vrot.lane.b32.xlu1 %v1733_v4, %s1786_s16  ;;  %v1204_v45 = vpop.f32.mrb[11].mxu0 }
 0x44d   : > { %1749 = vrot.lane.b32.xlu0 %v1738_v9, %s1786_s16  ;;  %969 = vperm.xlu1 %1691, %v963_v11  }
 0x451   : > { %974 = vperm.xlu0 %1692, %v964_v12   ;;  %979 = vperm.xlu1 %1691, %v965_v13  }
 0x455   : > { %984 = vperm.xlu0 %1692, %v966_v15   ;;  %1094 = vperm.xlu1 %1691, %v1088_v16  }
 0x459   : > { %1099 = vperm.xlu0 %1692, %v1089_v18   ;;  %1104 = vperm.xlu1 %1691, %v1090_v19  }
 0x45d   : > { %1109 = vperm.xlu0 %1692, %v1091_v22  }
 0x4b7   : > { %v1735_v23 = vpop.permute.xlu1 %1734 }
 0x4b8   : > { %v1737_v24 = vunpack.i.h.bf16 %v1735_v23  ;;  %v1736_v25 = vunpack.i.l.bf16 %v1735_v23 }
 0x4ba   : > { %v1613_v26 = vpack.c.bf16 %v1737_v24, %v1736_v25 }
 0x4bb   : > { %v1740_v27 = vpop.permute.xlu0 %1739  ;;  %v1745_v31 = vpop.permute.xlu1 %1744 }
 0x4bc   : > { %v1742_v28 = vunpack.i.h.bf16 %v1740_v27  ;;  %v1741_v29 = vunpack.i.l.bf16 %v1740_v27  ;;  %1615 = vmatprep.subr.msk.bf16.mxu1 %vm1614_vm3, %v1613_v26  ;;  %v1747_v32 = vunpack.i.h.bf16 %v1745_v31  ;;  %v1746_v33 = vunpack.i.l.bf16 %v1745_v31 }
 0x4bd   : > { %1618 = vmatpush3.bf16.msk.msra.mxu1 %vm1614_vm3, %v1613_v26 }
 0x4be   : > { %v1619_v30 = vpack.c.bf16 %v1742_v28, %v1741_v29  ;;  %v1633_v35 = vpack.c.bf16 %v1747_v32, %v1746_v33 }
 0x4bf   : > { %v1750_v34 = vpop.permute.xlu0 %1749 }
 0x4c0   : > { %1621 = vmatprep.subr.msk.bf16.mxu1 %vm1614_vm3, %v1619_v30  ;;  %v1752_v36 = vunpack.i.h.bf16 %v1750_v34  ;;  %v1751_v37 = vunpack.i.l.bf16 %v1750_v34 }
 0x4c1   : > { %1624 = vmatpush3.bf16.msk.msra.mxu1 %vm1614_vm3, %v1619_v30 }
 0x4c2   : > { %1626 = vmatprep.subr.bf16.mxu1 %v1625_v6  ;;  %v1639_v38 = vpack.c.bf16 %v1752_v36, %v1751_v37 }
 0x4c5   : > { %1628 = vmatpush3.bf16.msra.mxu1 %v1625_v6 }
 0x4c6   : > { %1630 = vmatprep.subr.bf16.mxu1 %v1629_v10 }
 0x4c9   : > { %1632 = vmatpush3.bf16.msra.mxu1 %v1629_v10 }
 0x4ca   : > { %1635 = vmatprep.subr.msk.bf16.mxu1 %vm1634_vm4, %v1633_v35 }
 0x4cc   : > { %v970_v47 = vpop.permute.xlu1 %969 }
 0x4cd   : > { %1638 = vmatpush3.bf16.msk.msra.mxu1 %vm1634_vm4, %v1633_v35 }
 0x4ce   : > { %1641 = vmatprep.subr.msk.bf16.mxu1 %vm1634_vm4, %v1639_v38 }
 0x4d0   : > { %v975_v46 = vpop.permute.xlu0 %974  ;;  %v980_v49 = vpop.permute.xlu1 %979 }
 0x4d1   : > { %1644 = vmatpush3.bf16.msk.msra.mxu1 %vm1634_vm4, %v1639_v38 }
 0x4d4   : > { %1530 = vmatmul.mubr.msk.f32.vlgmr.msra.gmra.mrb[4].mxu1 %vm637_vm12, %v960_v39  ;;  %v985_v48 = vpop.permute.xlu0 %984  ;;  %v1095_v52 = vpop.permute.xlu1 %1094 }
 0x4d5   : > { %1532 = vmatprep.mubr.msk.f32.mxu1 %vm637_vm12, %v961_v40 }
 0x4d8   : > { %1533 = vmatmul.mubr.msk.f32.gmra.mrb[6].mxu1 %vm637_vm12, %v962_v41  ;;  %v1100_v50 = vpop.permute.xlu0 %1099  ;;  %vm1217_vm12 = vcmask 130048   ;;  %v1105_v2 = vpop.permute.xlu1 %1104 }
 0x4dc   : > { %v1110_v62 = vpop.permute.xlu0 %1109 }
 0x5a7   : > { %v1531_v51 = vpop.f32.mrb[4].mxu1 }
 0x5a8   : > { %v1071_v53 = vadd.f32 %v1531_v51, %v975_v46  ;;  %v1065_v54 = vpop.f32.mrb[5].mxu1 }
 0x5a9   : > { %v1066_v55 = vadd.f32 %v1065_v54, %v970_v47 }
 0x5aa   : > { %v1646_v56 = vadd.f32 %v1100_v50, %v1071_v53 }
 0x5ab   : > { %v1534_v57 = vpop.f32.mrb[6].mxu1  ;;  %v1649_v58 = vadd.f32 %v1095_v52, %v1066_v55 }
 0x5ac   : > { %v1647_v59 = vadd.f32 %v1646_v56, %v1539_v42  ;;  %v1081_v60 = vadd.f32 %v1534_v57, %v985_v48  ;;  %v1075_v61 = vpop.f32.mrb[7].mxu1 }
 0x5ad   : > { %v1650_v63 = vadd.f32 %v1649_v58, %v1194_v43  ;;  %v1076_v1 = vadd.f32 %v1075_v61, %v980_v49 }
 0x5ae   : > { %1219 = vst.msk [vmem:[%s414_s26 + $0x8] sm:$0xff] %vm1217_vm12, %v1647_v59  ;;  %v1652_v3 = vadd.f32 %v1110_v62, %v1081_v60 }
 0x5af   : > { %1218 = vst.msk [vmem:[%s414_s26] sm:$0xff] %vm1217_vm12, %v1650_v63  ;;  %v1655_v4 = vadd.f32 %v1105_v2, %v1076_v1 }
 0x5b0   : > { %v1653_v5 = vadd.f32 %v1652_v3, %v1542_v44 }
 0x5b1   : > { %v1656_v6 = vadd.f32 %v1655_v4, %v1204_v45 }
 0x5b2   : > { %1221 = vst.msk [vmem:[%s414_s26 + $0x18] sm:$0xff] %vm1217_vm12, %v1653_v5 }
 0x5b3   : > { %1220 = vst.msk [vmem:[%s414_s26 + $0x10] sm:$0xff] %vm1217_vm12, %v1656_v6 }
 0x5b4 PF: > { %s21_s19 = sadd.s32 1, %s1775_s19   ;;  %s2051_s17 = smov %s1771_s18 }
 0x5b5   : > { %p18_p5 = scmp.ge.s32.totalorder %s21_s19, 4   ;;  %s2052_s18 = smov %s2054_s20 }
 0x5b7   :  { %20 = sbr.rel (!%p18_p5) target bundleno = 2 (0x2), region = 94 }

</bundles_post_ra>
